<compile_context>
chip_gen: v6e
topology: v6e:2x2x1
jax: 0.10.0
libtpu: 0.0.40
codegen_flags: <defaults>
</compile_context>

<pallas_src>
import jax
import jax.numpy as jnp
from jax.experimental import pallas as pl
from jax.experimental.pallas import tpu as pltpu


def _se_kernel(x_ref, w1_ref, b1_ref, w2_ref, b2_ref, o_ref):
    # x_ref: (Bt, C, HW)   w1_ref: (Cm, C)  b1_ref: (1, Cm)
    # w2_ref: (C, Cm)      b2_ref: (1, C)   o_ref: (Bt, C, HW)
    hw = x_ref.shape[2]

    # Squeeze: global average pool over the spatial (lane) axis, f32 accumulate.
    pool = jnp.sum(x_ref[...], axis=2, dtype=jnp.float32) * (1.0 / hw)   # (Bt, C)

    # Excitation FC1 (C -> Cm) + ReLU on the VPU/XLU (tiny dims; no MXU needed):
    w1 = w1_ref[...].astype(jnp.float32)
    h = jnp.sum(pool[:, None, :] * w1[None, :, :], axis=-1) \
        + b1_ref[...].astype(jnp.float32)
    h = jnp.maximum(h, 0.0)                                              # (Bt, Cm)

    # FC2 (Cm -> C) + Sigmoid -> per-(batch, channel) scale.
    w2 = w2_ref[...].astype(jnp.float32)
    s = jnp.sum(h[:, None, :] * w2[None, :, :], axis=-1) \
        + b2_ref[...].astype(jnp.float32)
    s = jax.nn.sigmoid(s)                                                # (Bt, C)

    # Scale the tile in its native dtype (no full-tile f32 copy).
    o_ref[...] = x_ref[...] * s.astype(o_ref.dtype)[:, :, None]


def _vmem_capacity_bytes():
    try:
        return int(pltpu.get_tpu_info().vmem_capacity_bytes)
    except Exception:
        kind = str(getattr(jax.devices()[0], "device_kind", "")).lower()
        return (64 << 20) if "v7" in kind else (128 << 20)


def _num_tensorcores():
    try:
        kind = str(getattr(jax.devices()[0], "device_kind", "")).lower()
        if "v7" in kind:
            return 2
    except Exception:
        pass
    return 1


def se_block(x, w1, b1, w2, b2, *, max_bt=None):
    """x: (B, C, H, W); weights follow PyTorch Linear layout (out, in)."""
    B, C, H, W = x.shape
    HW = H * W
    Cm = w1.shape[0]

    x_flat = x.reshape(B, C, HW)
    b1r = b1.reshape(1, Cm)     # lane-dense bias
    b2r = b2.reshape(1, C)      # lane-dense bias

    itemsize = jnp.dtype(x.dtype).itemsize
    bytes_per_batch = C * HW * itemsize

    # --- per-generation batch-tile selection -------------------------------
    vmem_cap = _vmem_capacity_bytes()
    num_tc = _num_tensorcores()
    # Usable ceiling: ~100 MiB on 128 MiB parts (v5e/v6e), cap-16 MiB (=48 MiB)
    # on 64 MiB v7x. Leaves real headroom for weights + Mosaic internals.
    if vmem_cap >= (128 << 20):
        vmem_ceiling = 100 << 20
    else:
        vmem_ceiling = max(32 << 20, int(vmem_cap) - (16 << 20))

    # Per grid step the pipeline holds 2 (double-buffered) input blocks and
    # 2 output blocks in the *native* dtype (kernel has no f32 tile copy).
    bt_cap = max(1, (vmem_ceiling - (2 << 20)) // (4 * bytes_per_batch))

    if num_tc >= 2 and B >= 2:
        # v7x: split across the 2 cores and aim for >=2 steps per core so the
        # BlockSpec pipeline can overlap DMA with compute, but never shrink
        # blocks below ~1 MiB just to manufacture extra steps.
        desired_steps = min(B, 2 * num_tc)
        bt_for_steps = max(1, B // desired_steps)
        bt_min_block = max(1, -(-(1 << 20) // bytes_per_batch))  # ceil(1MiB/row)
        bt = min(bt_cap, max(bt_for_steps, min(bt_min_block, B)))
    else:
        # Single TC (v5e/v6e): fewer, larger blocks win — no artificial split.
        bt = min(bt_cap, B)

    if max_bt is not None:
        bt = min(bt, int(max_bt))
    bt = max(1, min(bt, B))
    # Ragged last block if bt does not divide B — no host-side padding pass.
    grid_b = pl.cdiv(B, bt)

    per_step_bytes = 4 * bt * bytes_per_batch
    vmem_limit = int(min(vmem_ceiling, max(32 << 20, per_step_bytes + (4 << 20))))

    cost = pl.CostEstimate(
        flops=int(3 * B * C * HW + 4 * B * C * Cm),
        transcendentals=int(B * C),
        bytes_accessed=int(2 * B * C * HW * itemsize
                           + (2 * C * Cm + C + Cm) * 4),
    )

    out_flat = pl.pallas_call(
        _se_kernel,
        out_shape=jax.ShapeDtypeStruct((B, C, HW), x.dtype),
        grid_spec=pltpu.PrefetchScalarGridSpec(
            num_scalar_prefetch=0,
            grid=(grid_b,),
            in_specs=[
                pl.BlockSpec((bt, C, HW), lambda b: (b, 0, 0)),   # x batch-tile
                pl.BlockSpec((Cm, C), lambda b: (0, 0)),          # w1
                pl.BlockSpec((1, Cm), lambda b: (0, 0)),          # b1 (lane-dense)
                pl.BlockSpec((C, Cm), lambda b: (0, 0)),          # w2
                pl.BlockSpec((1, C), lambda b: (0, 0)),           # b2 (lane-dense)
            ],
            out_specs=pl.BlockSpec((bt, C, HW), lambda b: (b, 0, 0)),
        ),
        compiler_params=pltpu.CompilerParams(
            dimension_semantics=("parallel",),
            vmem_limit_bytes=vmem_limit,
        ),
        cost_estimate=cost,
    )(x_flat, w1, b1r, w2, b2r)

    return out_flat.reshape(B, C, H, W)


def se_block_reference(x, w1, b1, w2, b2):
    """Pure-JAX reference mirroring the PyTorch forward."""
    pool = jnp.mean(x, axis=(2, 3))                       # (B, C)
    h = jnp.maximum(pool @ w1.T + b1, 0.0)                # (B, Cm)
    s = jax.nn.sigmoid(h @ w2.T + b2)                     # (B, C)
    return x * s[:, :, None, None]


if __name__ == "__main__":
    # Module config: SE_block(in_channel=32, channel_expand_factor=2, ratio=4)
    #   intermediate_channel = int(32 / 2 // 4) = 4
    B, C, H, W = 2, 32, 16, 16
    Cm = int(C / 2 // 4)

    key = jax.random.PRNGKey(0)
    kx, k1, k2, k3, k4, kx2 = jax.random.split(key, 6)

    x = jax.random.normal(kx, (B, C, H, W), dtype=jnp.float32)
    # PyTorch Linear layout: (out_features, in_features)
    w1 = jax.random.normal(k1, (Cm, C), dtype=jnp.float32) * 0.1
    b1 = jax.random.normal(k2, (Cm,), dtype=jnp.float32) * 0.1
    w2 = jax.random.normal(k3, (C, Cm), dtype=jnp.float32) * 0.1
    b2 = jax.random.normal(k4, (C,), dtype=jnp.float32) * 0.1

    out = se_block(x, w1, b1, w2, b2)
    out = jax.block_until_ready(out)
    ref = se_block_reference(x, w1, b1, w2, b2)
    assert out.shape == (B, C, H, W)
    assert jnp.allclose(out, ref, atol=1e-5, rtol=1e-5), "mismatch vs reference"

    # Also exercise the multi-step grid with a ragged last batch block
    # (B=3, forced block of 2) to validate the partial-block write path.
    x3 = jax.random.normal(kx2, (3, C, H, W), dtype=jnp.float32)
    out3 = jax.block_until_ready(se_block(x3, w1, b1, w2, b2, max_bt=2))
    ref3 = se_block_reference(x3, w1, b1, w2, b2)
    assert jnp.allclose(out3, ref3, atol=1e-5, rtol=1e-5), "ragged-block mismatch"

    print("KERNEL_OK")
</pallas_src>

<mosaic_0001>
module attributes {stable_mosaic.version = 11 : i64} {
  func.func @_se_kernel(%arg0: i32, %arg1: memref<2x32x256xf32, #tpu.memory_space<vmem>>, %arg2: memref<4x32xf32, #tpu.memory_space<vmem>>, %arg3: memref<1x4xf32, #tpu.memory_space<vmem>>, %arg4: memref<32x4xf32, #tpu.memory_space<vmem>>, %arg5: memref<1x32xf32, #tpu.memory_space<vmem>>, %arg6: memref<2x32x256xf32, #tpu.memory_space<vmem>>) attributes {dimension_semantics = [#tpu.dimension_semantics<parallel>], iteration_bounds = array<i64: 1>, scalar_prefetch = 0 : i64, scratch_operands = 0 : i64, tpu.core_type = #tpu.core_type<tc>, window_params = [{transform_indices = @transform_0, window_bounds = array<i64: 2, 32, 256>}, {pipeline_mode = #tpu.pipeline_mode<synchronous>, transform_indices = @transform_1, window_bounds = array<i64: 4, 32>}, {pipeline_mode = #tpu.pipeline_mode<synchronous>, transform_indices = @transform_2, window_bounds = array<i64: 1, 4>}, {pipeline_mode = #tpu.pipeline_mode<synchronous>, transform_indices = @transform_3, window_bounds = array<i64: 32, 4>}, {pipeline_mode = #tpu.pipeline_mode<synchronous>, transform_indices = @transform_4, window_bounds = array<i64: 1, 32>}, {transform_indices = @transform_5, window_bounds = array<i64: 2, 32, 256>}]} {
    %c0 = arith.constant 0 : index
    %c0_0 = arith.constant 0 : index
    %c0_1 = arith.constant 0 : index
    %0 = vector.load %arg1[%c0, %c0_0, %c0_1] : memref<2x32x256xf32, #tpu.memory_space<vmem>>, vector<2x32x256xf32>
    %cst = arith.constant dense<0.000000e+00> : vector<2x32xf32>
    %1 = vector.multi_reduction <add>, %0, %cst [2] : vector<2x32x256xf32> to vector<2x32xf32>
    %cst_2 = arith.constant 3.906250e-03 : f32
    %2 = vector.broadcast %cst_2 : f32 to vector<2x32xf32>
    %3 = arith.mulf %1, %2 : vector<2x32xf32>
    %c0_3 = arith.constant 0 : index
    %c0_4 = arith.constant 0 : index
    %4 = vector.load %arg2[%c0_3, %c0_4] : memref<4x32xf32, #tpu.memory_space<vmem>>, vector<4x32xf32>
    %5 = vector.shape_cast %3 : vector<2x32xf32> to vector<2x1x32xf32>
    %6 = vector.shape_cast %4 : vector<4x32xf32> to vector<1x4x32xf32>
    %7 = vector.broadcast %5 : vector<2x1x32xf32> to vector<2x4x32xf32>
    %8 = vector.broadcast %6 : vector<1x4x32xf32> to vector<2x4x32xf32>
    %9 = arith.mulf %7, %8 : vector<2x4x32xf32>
    %cst_5 = arith.constant dense<0.000000e+00> : vector<2x4xf32>
    %10 = vector.multi_reduction <add>, %9, %cst_5 [2] : vector<2x4x32xf32> to vector<2x4xf32>
    %c0_6 = arith.constant 0 : index
    %c0_7 = arith.constant 0 : index
    %11 = vector.load %arg3[%c0_6, %c0_7] : memref<1x4xf32, #tpu.memory_space<vmem>>, vector<1x4xf32>
    %12 = vector.broadcast %11 : vector<1x4xf32> to vector<2x4xf32>
    %13 = arith.addf %10, %12 : vector<2x4xf32>
    %cst_8 = arith.constant 0.000000e+00 : f32
    %14 = vector.broadcast %cst_8 : f32 to vector<2x4xf32>
    %15 = arith.maximumf %13, %14 : vector<2x4xf32>
    %c0_9 = arith.constant 0 : index
    %c0_10 = arith.constant 0 : index
    %16 = vector.load %arg4[%c0_9, %c0_10] : memref<32x4xf32, #tpu.memory_space<vmem>>, vector<32x4xf32>
    %17 = vector.shape_cast %15 : vector<2x4xf32> to vector<2x1x4xf32>
    %18 = vector.shape_cast %16 : vector<32x4xf32> to vector<1x32x4xf32>
    %19 = vector.broadcast %17 : vector<2x1x4xf32> to vector<2x32x4xf32>
    %20 = vector.broadcast %18 : vector<1x32x4xf32> to vector<2x32x4xf32>
    %21 = arith.mulf %19, %20 : vector<2x32x4xf32>
    %cst_11 = arith.constant dense<0.000000e+00> : vector<2x32xf32>
    %22 = vector.multi_reduction <add>, %21, %cst_11 [2] : vector<2x32x4xf32> to vector<2x32xf32>
    %c0_12 = arith.constant 0 : index
    %c0_13 = arith.constant 0 : index
    %23 = vector.load %arg5[%c0_12, %c0_13] : memref<1x32xf32, #tpu.memory_space<vmem>>, vector<1x32xf32>
    %24 = vector.broadcast %23 : vector<1x32xf32> to vector<2x32xf32>
    %25 = arith.addf %22, %24 : vector<2x32xf32>
    %26 = arith.negf %25 : vector<2x32xf32>
    %27 = math.exp %26 : vector<2x32xf32>
    %cst_14 = arith.constant 1.000000e+00 : f32
    %28 = vector.broadcast %cst_14 : f32 to vector<2x32xf32>
    %29 = arith.addf %28, %27 : vector<2x32xf32>
    %30 = arith.divf %28, %29 : vector<2x32xf32>
    %c0_15 = arith.constant 0 : index
    %c0_16 = arith.constant 0 : index
    %c0_17 = arith.constant 0 : index
    %31 = vector.load %arg1[%c0_15, %c0_16, %c0_17] : memref<2x32x256xf32, #tpu.memory_space<vmem>>, vector<2x32x256xf32>
    %32 = vector.shape_cast %30 : vector<2x32xf32> to vector<2x32x1xf32>
    %33 = vector.broadcast %32 : vector<2x32x1xf32> to vector<2x32x256xf32>
    %34 = arith.mulf %31, %33 : vector<2x32x256xf32>
    %c0_18 = arith.constant 0 : index
    %c0_19 = arith.constant 0 : index
    %c0_20 = arith.constant 0 : index
    %35 = vector.load %arg6[%c0_18, %c0_19, %c0_20] : memref<2x32x256xf32, #tpu.memory_space<vmem>>, vector<2x32x256xf32>
    tpu.vector_store %arg6[%c0_18, %c0_19, %c0_20], %34 {strides = array<i32>} : memref<2x32x256xf32, #tpu.memory_space<vmem>>, vector<2x32x256xf32>,
    return
  }
  func.func @transform_0(%arg0: i32) -> (i32, i32, i32) {
    %c0_i32 = arith.constant 0 : i32
    %c0_i32_0 = arith.constant 0 : i32
    %c0_i32_1 = arith.constant 0 : i32
    return %arg0, %c0_i32, %c0_i32_0 : i32, i32, i32
  }
  func.func @transform_1(%arg0: i32) -> (i32, i32) {
    %c0_i32 = arith.constant 0 : i32
    %c0_i32_0 = arith.constant 0 : i32
    %c0_i32_1 = arith.constant 0 : i32
    return %c0_i32, %c0_i32_0 : i32, i32
  }
  func.func @transform_2(%arg0: i32) -> (i32, i32) {
    %c0_i32 = arith.constant 0 : i32
    %c0_i32_0 = arith.constant 0 : i32
    %c0_i32_1 = arith.constant 0 : i32
    return %c0_i32, %c0_i32_0 : i32, i32
  }
  func.func @transform_3(%arg0: i32) -> (i32, i32) {
    %c0_i32 = arith.constant 0 : i32
    %c0_i32_0 = arith.constant 0 : i32
    %c0_i32_1 = arith.constant 0 : i32
    return %c0_i32, %c0_i32_0 : i32, i32
  }
  func.func @transform_4(%arg0: i32) -> (i32, i32) {
    %c0_i32 = arith.constant 0 : i32
    %c0_i32_0 = arith.constant 0 : i32
    %c0_i32_1 = arith.constant 0 : i32
    return %c0_i32, %c0_i32_0 : i32, i32
  }
  func.func @transform_5(%arg0: i32) -> (i32, i32, i32) {
    %c0_i32 = arith.constant 0 : i32
    %c0_i32_0 = arith.constant 0 : i32
    %c0_i32_1 = arith.constant 0 : i32
    return %arg0, %c0_i32, %c0_i32_0 : i32, i32, i32
  }
}

</mosaic_0001>

<bundles_post_ra>
// kernel: tpu_custom_call.1
= control target key start
LH: loop header
LB: loop body
LE: loop exit
PB: predicated region body
PF: predicated region fallthrough
CT: control target
= control target key end

     0   :  { %10 = vsyncpa [#allocation3], 0  ;;  %s2309_s0 = inlined_call_operand.hbm [shape: f32[2,32,256], index: 0, kind: input, shape index: {}]   ;;  %s2310_s1 = inlined_call_operand.vmem [shape: f32[4,32], index: 1, kind: input, shape index: {}]   ;;  %s2311_s2 = inlined_call_operand.vmem [shape: f32[1,4], index: 2, kind: input, shape index: {}]   ;;  %s2312_s3 = inlined_call_operand.vmem [shape: f32[32,4], index: 3, kind: input, shape index: {}]   ;;  %s2313_s4 = inlined_call_operand.vmem [shape: f32[1,32], index: 4, kind: input, shape index: {}]   ;;  %s2314_s5 = inlined_call_operand.hbm [shape: f32[2,32,256], index: 5, kind: output, shape index: {}]  }
   0x1   :  { %11 = vsyncpa [#allocation4], 0  ;;  %s1741_s18 = smov [#allocation2]  }
   0x2   :  { %s17_s19 = sshll.u32 %s1741_s18, 4  ;;  %s18_s19 = int_to_ptr.vmem [resolvable:$true] %s17_s19 }
   0x3   :  { %s1705_s20 = scalar_lea.vmem %s18_s19, 2048  ;;  %p1710_p1 = scmp.lt.s32.totalorder %s18_s19, %s18_s19 }
   0x4   :  { %p1706_p0 = scmp.ne.s32.totalorder %s18_s19, %s1705_s20  ;;  %p1711_p2 = scmp.lt.s32.totalorder %s1705_s20, %s1705_s20 }
   0x6   :  { %p1712_p3 = por %p1711_p2, %p1710_p1 }
   0x8   :  { %p1713_p4 = pnand %p1712_p3, %p1706_p0 }
   0xa   :  { %1716 = shalt.err (!%p1713_p4)
}
   0xb   :  { %s1742_s21 = smov 256   ;;  %s1743_s22 = smov 16  }
   0xc   :  { %23 = dma.hbm_to_vmem [thread:$0]  %s2309_s0, 2048, %s18_s19, [#allocation3], %s1742_s21, %s1742_s21, %s1743_s22  }
   0xd   :  { %1737 = dma.done.wait [#allocation3], 2048  }
   0xe   :  { %1738 = vsyncadd [#allocation3], 4294965248  ;;  %v39_v0 = vld [vmem:[#allocation2 + $0x20] sm:$0xff]  ;;  %v40_v1 = vld [vmem:[#allocation2 + $0x28] sm:$0xff]  ;;  %v85_v24 = vlaneseq  ;;  %v1744_v29 = vmov 0   ;;  %vm348_vm0 = vcmask 130112  }
   0xf   :  { %v35_v2 = vld [vmem:[#allocation2] sm:$0xff]  ;;  %v57_v3 = vadd.f32 %v40_v1, %v39_v0  ;;  %v36_v4 = vld [vmem:[#allocation2 + $0x8] sm:$0xff]  ;;  %v41_v5 = vld [vmem:[#allocation2 + $0x30] sm:$0xff]  ;;  %1648 = vset.pattern.permute.xlu1 %v1744_v29  ;;  %1647 = vset.pattern.permute.xlu0 %v1744_v29  ;;  %vm355_vm1 = vcmask 195712   ;;  %vm362_vm2 = vcmask 261312   ;;  %vm497_vm3 = vcmask 1041409  }
  0x10   :  { %v42_v6 = vld [vmem:[#allocation2 + $0x38] sm:$0xff]  ;;  %v51_v7 = vadd.f32 %v36_v4, %v35_v2  ;;  %v37_v8 = vld [vmem:[#allocation2 + $0x10] sm:$0xff]  ;;  %v43_v14 = vld [vmem:[#allocation2 + $0x40] sm:$0xff]  ;;  %v1783_v25 = vshrl.u32 %v85_v24, 7  ;;  %vm499_vm4 = vcmask 1042434   ;;  %vm501_vm5 = vcmask 1043459  }
  0x11   :  { %v38_v9 = vld [vmem:[#allocation2 + $0x18] sm:$0xff]  ;;  %58 = vadd.xlane.f32.xlu1 %v57_v3  ;;  %v60_v10 = vadd.f32 %v42_v6, %v41_v5  ;;  %v45_v12 = vld [vmem:[#allocation2 + $0x50] sm:$0xff]  ;;  %v44_v15 = vld [vmem:[#allocation2 + $0x48] sm:$0xff]  ;;  %vm508_vm6 = vcmask 257024   ;;  %vm1372_vm7 = vcmask 1044484   ;;  %vm1374_vm8 = vcmask 1045509  }
  0x12   :  { %52 = vadd.xlane.f32.xlu0 %v51_v7  ;;  %v54_v11 = vadd.f32 %v38_v9, %v37_v8  ;;  %v46_v13 = vld [vmem:[#allocation2 + $0x58] sm:$0xff]  ;;  %v63_v17 = vadd.f32 %v44_v15, %v43_v14  ;;  %v49_v18 = vld [vmem:[#allocation2 + $0x70] sm:$0xff]  ;;  %v47_v20 = vld [vmem:[#allocation2 + $0x60] sm:$0xff]  ;;  %v1786_v26 = vsub.s32 0, %v1783_v25  ;;  %v1793_v30 = vsub.s32 1, %v1783_v25 }
  0x13   :  { %v66_v16 = vadd.f32 %v46_v13, %v45_v12  ;;  %v50_v19 = vld [vmem:[#allocation2 + $0x78] sm:$0xff]  ;;  %v48_v21 = vld [vmem:[#allocation2 + $0x68] sm:$0xff]  ;;  %v83_v27 = vld [vmem:[%s2310_s1] sm:$0xf]  ;;  %v1797_v32 = vsub.s32 2, %v1783_v25  ;;  %v1801_v34 = vsub.s32 3, %v1783_v25 }
  0x14   :  { %v72_v22 = vadd.f32 %v50_v19, %v49_v18  ;;  %v69_v23 = vadd.f32 %v48_v21, %v47_v20  ;;  %v88_v28 = vrot.slane %v83_v27, %v1786_v26  ;;  %v107_v31 = vrot.slane %v83_v27, %v1793_v30  ;;  %v1807_v36 = vld [vmem:[%s2312_s3] sm:$0xff] }
  0x15   :  { %61 = vadd.xlane.f32.xlu1 %v60_v10  ;;  %v126_v33 = vrot.slane %v83_v27, %v1797_v32  ;;  %v145_v35 = vrot.slane %v83_v27, %v1801_v34  ;;  %v1632_v37 = vld [vmem:[%s2311_s2] ss:$0 sm:$0xff]  ;;  %v540_v38 = vrot.slane %v1807_v36, %v1786_v26  ;;  %v554_v39 = vrot.slane %v1807_v36, %v1797_v32 }
  0x16   :  { %55 = vadd.xlane.f32.xlu0 %v54_v11  ;;  %v547_v40 = vrot.slane %v1807_v36, %v1793_v30  ;;  %v561_v41 = vrot.slane %v1807_v36, %v1801_v34  ;;  %vm1376_vm9 = vcmask 1046534   ;;  %vm1378_vm10 = vcmask 1047559  }
  0x17   :  { %vm1437_vm11 = vcmask 31744  }
  0x19   :  { %67 = vadd.xlane.f32.xlu1 %v66_v16 }
  0x1a   :  { %64 = vadd.xlane.f32.xlu0 %v63_v17 }
  0x1d   :  { %73 = vadd.xlane.f32.xlu1 %v72_v22 }
  0x1e   :  { %70 = vadd.xlane.f32.xlu0 %v69_v23 }
  0x2e   :  { %94 = vbcast.lane.b32.xlu1 %v88_v28, 264 }
  0x32   :  { %98 = vbcast.lane.b32.xlu1 %v88_v28, 272 }
  0x34   :  { %90 = vbcast.lane.b32.xlu0 %v88_v28, 256 }
  0x36   :  { %102 = vbcast.lane.b32.xlu1 %v88_v28, 280 }
  0x38   :  { %109 = vbcast.lane.b32.xlu0 %v107_v31, 256 }
  0x3a   :  { %113 = vbcast.lane.b32.xlu1 %v107_v31, 264 }
  0x3c   :  { %117 = vbcast.lane.b32.xlu0 %v107_v31, 272 }
  0x3e   :  { %121 = vbcast.lane.b32.xlu1 %v107_v31, 280 }
  0x40   :  { %128 = vbcast.lane.b32.xlu0 %v126_v33, 256 }
  0x42   :  { %132 = vbcast.lane.b32.xlu1 %v126_v33, 264 }
  0x44   :  { %136 = vbcast.lane.b32.xlu0 %v126_v33, 272 }
  0x46   :  { %140 = vbcast.lane.b32.xlu1 %v126_v33, 280 }
  0x48   :  { %147 = vbcast.lane.b32.xlu0 %v145_v35, 256 }
  0x4a   :  { %151 = vbcast.lane.b32.xlu1 %v145_v35, 264 }
  0x4c   :  { %155 = vbcast.lane.b32.xlu0 %v145_v35, 272 }
  0x4e   :  { %159 = vbcast.lane.b32.xlu1 %v145_v35, 280 }
  0x50   :  { %522 = vbcast.lane.b32.xlu0 %v1632_v37, 256 }
  0x52   :  { %542 = vbcast.lane.b32.xlu1 %v540_v38, 256 }
  0x54   :  { %556 = vbcast.lane.b32.xlu0 %v554_v39, 256 }
  0x56   :  { %549 = vbcast.lane.b32.xlu1 %v547_v40, 256 }
  0x5a   :  { %563 = vbcast.lane.b32.xlu1 %v561_v41, 256 }
  0x9a   :  { %v59_v42 = vpop.xlane.xlu1 %58 }
  0x9b   :  { %v53_v43 = vpop.xlane.xlu0 %52  ;;  %v77_v56 = vmul.f32 0.00390625, %v59_v42 }
  0x9c   :  { %v75_v51 = vmul.f32 0.00390625, %v53_v43 }
  0x9e   :  { %v62_v44 = vpop.xlane.xlu1 %61 }
  0x9f   :  { %v56_v45 = vpop.xlane.xlu0 %55  ;;  %v78_v60 = vmul.f32 0.00390625, %v62_v44 }
  0xa0   :  { %v76_v50 = vmul.f32 0.00390625, %v56_v45 }
  0xa2   :  { %v68_v46 = vpop.xlane.xlu1 %67 }
  0xa3   :  { %v65_v47 = vpop.xlane.xlu0 %64  ;;  %v80_v27 = vmul.f32 0.00390625, %v68_v46  ;;  %v574_v46 = vsub.s32 5, %v1783_v25 }
  0xa4   :  { %v79_v20 = vmul.f32 0.00390625, %v65_v47 }
  0xa6   :  { %v74_v48 = vpop.xlane.xlu1 %73 }
  0xa7   :  { %v71_v49 = vpop.xlane.xlu0 %70  ;;  %v82_v33 = vmul.f32 0.00390625, %v74_v48 }
  0xa8   :  { %v81_v28 = vmul.f32 0.00390625, %v71_v49  ;;  %v575_v49 = vrot.slane %v1807_v36, %v574_v46 }
  0xaa   :  { %v95_v52 = vpop.permute.xlu1 %94 }
  0xab   :  { %v178_v53 = vmul.f32 %v95_v52, %v76_v50  ;;  %v91_v54 = vpop.permute.xlu0 %90  ;;  %v194_v29 = vmul.f32 %v95_v52, %v80_v27 }
  0xac   :  { %v177_v55 = vmul.f32 %v91_v54, %v75_v51  ;;  %v193_v22 = vmul.f32 %v91_v54, %v79_v20 }
  0xad   :  { %245 = vperm.xlu1 %1648, %v178_v53  }
  0xae   :  { %242 = vperm.xlu0 %1647, %v177_v55   ;;  %v99_v57 = vpop.permute.xlu1 %98  ;;  %v581_v55 = vsub.s32 6, %v1783_v25 }
  0xaf   :  { %v179_v58 = vmul.f32 %v99_v57, %v77_v56  ;;  %v110_v59 = vpop.permute.xlu0 %109  ;;  %v195_v31 = vmul.f32 %v99_v57, %v81_v28 }
  0xb0   :  { %v181_v62 = vmul.f32 %v110_v59, %v75_v51  ;;  %v197_v35 = vmul.f32 %v110_v59, %v79_v20 }
  0xb1   :  { %248 = vperm.xlu1 %1648, %v179_v58   ;;  %v582_v58 = vrot.slane %v1807_v36, %v581_v55 }
  0xb2   :  { %v103_v61 = vpop.permute.xlu1 %102 }
  0xb3   :  { %v180_v63 = vmul.f32 %v103_v61, %v78_v60  ;;  %v118_v0 = vpop.permute.xlu0 %117  ;;  %v196_v37 = vmul.f32 %v103_v61, %v82_v33 }
  0xb4   :  { %v183_v2 = vmul.f32 %v118_v0, %v77_v56  ;;  %v199_v38 = vmul.f32 %v118_v0, %v81_v28 }
  0xb5   :  { %251 = vperm.xlu0 %1647, %v180_v63   ;;  %254 = vperm.xlu1 %1648, %v181_v62  }
  0xb6   :  { %v114_v1 = vpop.permute.xlu1 %113 }
  0xb7   :  { %v182_v3 = vmul.f32 %v114_v1, %v76_v50  ;;  %v129_v4 = vpop.permute.xlu0 %128  ;;  %v198_v39 = vmul.f32 %v114_v1, %v80_v27  ;;  %v531_v1 = vld [vmem:[%s2312_s3 + $0x10] sm:$0xff] }
  0xb8   :  { %v185_v6 = vmul.f32 %v129_v4, %v75_v51  ;;  %v201_v40 = vmul.f32 %v129_v4, %v79_v20  ;;  %v652_v4 = vrot.slane %v531_v1, %v1786_v26 }
  0xb9   :  { %257 = vperm.xlu0 %1647, %v182_v3   ;;  %260 = vperm.xlu1 %1648, %v183_v2   ;;  %v673_v3 = vrot.slane %v531_v1, %v1801_v34 }
  0xba   :  { %v122_v5 = vpop.permute.xlu1 %121 }
  0xbb   :  { %v184_v7 = vmul.f32 %v122_v5, %v78_v60  ;;  %v137_v8 = vpop.permute.xlu0 %136  ;;  %v200_v41 = vmul.f32 %v122_v5, %v82_v33  ;;  %v687_v5 = vrot.slane %v531_v1, %v574_v46 }
  0xbc   :  { %v187_v10 = vmul.f32 %v137_v8, %v77_v56  ;;  %v203_v42 = vmul.f32 %v137_v8, %v81_v28 }
  0xbd   :  { %263 = vperm.xlu0 %1647, %v184_v7   ;;  %266 = vperm.xlu1 %1648, %v185_v6   ;;  %v666_v6 = vrot.slane %v531_v1, %v1797_v32 }
  0xbe   :  { %v133_v9 = vpop.permute.xlu1 %132 }
  0xbf   :  { %v186_v11 = vmul.f32 %v133_v9, %v76_v50  ;;  %v148_v12 = vpop.permute.xlu0 %147  ;;  %v202_v43 = vmul.f32 %v133_v9, %v80_v27  ;;  %v532_v9 = vld [vmem:[%s2312_s3 + $0x18] sm:$0xff] }
  0xc0   :  { %v189_v14 = vmul.f32 %v148_v12, %v75_v51  ;;  %v205_v44 = vmul.f32 %v148_v12, %v79_v20  ;;  %v567_v51 = vsub.s32 4, %v1783_v25  ;;  %v729_v12 = vrot.slane %v532_v9, %v1801_v34 }
  0xc1   :  { %269 = vperm.xlu0 %1647, %v186_v11   ;;  %272 = vperm.xlu1 %1648, %v187_v10   ;;  %v715_v10 = vrot.slane %v532_v9, %v1793_v30  ;;  %v694_v11 = vrot.slane %v531_v1, %v581_v55 }
  0xc2   :  { %v141_v13 = vpop.permute.xlu1 %140  ;;  %v568_v54 = vrot.slane %v1807_v36, %v567_v51  ;;  %v680_v8 = vrot.slane %v531_v1, %v567_v51 }
  0xc3   :  { %v188_v15 = vmul.f32 %v141_v13, %v78_v60  ;;  %v156_v16 = vpop.permute.xlu0 %155  ;;  %v204_v45 = vmul.f32 %v141_v13, %v82_v33  ;;  %v708_v13 = vrot.slane %v532_v9, %v1786_v26 }
  0xc4   :  { %v191_v18 = vmul.f32 %v156_v16, %v77_v56  ;;  %v207_v47 = vmul.f32 %v156_v16, %v81_v28  ;;  %v530_v56 = vld [vmem:[%s2312_s3 + $0x8] sm:$0xff]  ;;  %v722_v16 = vrot.slane %v532_v9, %v1797_v32 }
  0xc5   :  { %275 = vperm.xlu0 %1647, %v188_v15   ;;  %278 = vperm.xlu1 %1648, %v189_v14   ;;  %v603_v57 = vrot.slane %v530_v56, %v1793_v30  ;;  %v617_v59 = vrot.slane %v530_v56, %v1801_v34  ;;  %v631_v61 = vrot.slane %v530_v56, %v574_v46 }
  0xc6   :  { %v152_v17 = vpop.permute.xlu1 %151  ;;  %v610_v62 = vrot.slane %v530_v56, %v1797_v32  ;;  %v624_v0 = vrot.slane %v530_v56, %v567_v51  ;;  %v638_v2 = vrot.slane %v530_v56, %v581_v55  ;;  %v743_v15 = vrot.slane %v532_v9, %v574_v46 }
  0xc7   :  { %v190_v19 = vmul.f32 %v152_v17, %v76_v50  ;;  %v206_v48 = vmul.f32 %v152_v17, %v80_v27  ;;  %v588_v50 = vsub.s32 7, %v1783_v25  ;;  %v1853_v34 = vpop.permute.xlu0 %522 }
  0xc9   :  { %281 = vperm.xlu0 %1647, %v190_v19   ;;  %284 = vperm.xlu1 %1648, %v191_v18   ;;  %v589_v53 = vrot.slane %v1807_v36, %v588_v50  ;;  %v645_v63 = vrot.slane %v530_v56, %v588_v50  ;;  %v659_v36 = vrot.slane %v531_v1, %v1793_v30 }
  0xca   :  { %v160_v21 = vpop.permute.xlu1 %159  ;;  %v701_v7 = vrot.slane %v531_v1, %v588_v50  ;;  %v757_v17 = vrot.slane %v532_v9, %v588_v50  ;;  %v736_v18 = vrot.slane %v532_v9, %v567_v51  ;;  %v750_v19 = vrot.slane %v532_v9, %v581_v55 }
  0xcb   :  { %v192_v23 = vmul.f32 %v160_v21, %v78_v60  ;;  %v208_v52 = vmul.f32 %v160_v21, %v82_v33  ;;  %v596_v60 = vrot.slane %v530_v56, %v1786_v26  ;;  %v1857_v26 = vpop.permute.xlu0 %556 }
  0xcd   :  { %287 = vperm.xlu0 %1647, %v192_v23   ;;  %290 = vperm.xlu1 %1648, %v193_v22  }
  0xce   :  { %v1848_v14 = vpop.permute.xlu1 %542 }
  0xd1   :  { %293 = vperm.xlu0 %1647, %v194_v29   ;;  %296 = vperm.xlu1 %1648, %v195_v31   ;;  %v338_v31 = vand.u32 127, %v85_v24 }
  0xd2   :  { %v1851_v30 = vpop.permute.xlu1 %549 }
  0xd5   :  { %299 = vperm.xlu0 %1647, %v196_v37   ;;  %302 = vperm.xlu1 %1648, %v197_v35   ;;  %v343_v37 = vadd.s32 4294967288, %v338_v31 }
  0xd6   :  { %v1855_v20 = vpop.permute.xlu1 %563 }
  0xd9   :  { %305 = vperm.xlu0 %1647, %v198_v39   ;;  %308 = vperm.xlu1 %1648, %v199_v38   ;;  %v350_v38 = vadd.s32 4294967280, %v338_v31 }
  0xdd   :  { %311 = vperm.xlu0 %1647, %v200_v41   ;;  %314 = vperm.xlu1 %1648, %v201_v40   ;;  %v1861_v41 = vsub.s32 %v343_v37, %v1783_v25 }
  0xe1   :  { %317 = vperm.xlu0 %1647, %v202_v43   ;;  %320 = vperm.xlu1 %1648, %v203_v42   ;;  %v357_v42 = vadd.s32 4294967272, %v338_v31  ;;  %v1864_v43 = vsub.s32 %v338_v31, %v1783_v25 }
  0xe5   :  { %323 = vperm.xlu0 %1647, %v204_v45   ;;  %326 = vperm.xlu1 %1648, %v205_v44   ;;  %v1868_v45 = vsub.s32 %v350_v38, %v1783_v25 }
  0xe9   :  { %329 = vperm.xlu0 %1647, %v206_v48   ;;  %332 = vperm.xlu1 %1648, %v207_v47  }
  0xed   :  { %335 = vperm.xlu0 %1647, %v208_v52   ;;  %577 = vbcast.lane.b32.xlu1 %v575_v49, 256  ;;  %v1873_v49 = vsub.s32 %v357_v42, %v1783_v25 }
  0xf1   :  { %591 = vbcast.lane.b32.xlu1 %v589_v53, 256  ;;  %570 = vbcast.lane.b32.xlu0 %v568_v54, 256 }
  0xf5   :  { %605 = vbcast.lane.b32.xlu1 %v603_v57, 256  ;;  %584 = vbcast.lane.b32.xlu0 %v582_v58, 256 }
  0xf9   :  { %619 = vbcast.lane.b32.xlu1 %v617_v59, 256  ;;  %598 = vbcast.lane.b32.xlu0 %v596_v60, 256 }
  0xfd   :  { %633 = vbcast.lane.b32.xlu1 %v631_v61, 256  ;;  %612 = vbcast.lane.b32.xlu0 %v610_v62, 256 }
 0x101   :  { %647 = vbcast.lane.b32.xlu1 %v645_v63, 256  ;;  %626 = vbcast.lane.b32.xlu0 %v624_v0, 256 }
 0x105   :  { %661 = vbcast.lane.b32.xlu1 %v659_v36, 256  ;;  %640 = vbcast.lane.b32.xlu0 %v638_v2, 256 }
 0x109   :  { %675 = vbcast.lane.b32.xlu1 %v673_v3, 256  ;;  %654 = vbcast.lane.b32.xlu0 %v652_v4, 256 }
 0x10d   :  { %689 = vbcast.lane.b32.xlu1 %v687_v5, 256  ;;  %668 = vbcast.lane.b32.xlu0 %v666_v6, 256 }
 0x111   :  { %703 = vbcast.lane.b32.xlu1 %v701_v7, 256  ;;  %682 = vbcast.lane.b32.xlu0 %v680_v8, 256 }
 0x115   :  { %717 = vbcast.lane.b32.xlu1 %v715_v10, 256  ;;  %696 = vbcast.lane.b32.xlu0 %v694_v11, 256 }
 0x119   :  { %731 = vbcast.lane.b32.xlu1 %v729_v12, 256  ;;  %710 = vbcast.lane.b32.xlu0 %v708_v13, 256 }
 0x11d   :  { %745 = vbcast.lane.b32.xlu1 %v743_v15, 256  ;;  %724 = vbcast.lane.b32.xlu0 %v722_v16, 256 }
 0x121   :  { %759 = vbcast.lane.b32.xlu1 %v757_v17, 256  ;;  %738 = vbcast.lane.b32.xlu0 %v736_v18, 256 }
 0x125   :  { %752 = vbcast.lane.b32.xlu0 %v750_v19, 256 }
 0x128   :  { %v246_v21 = vpop.permute.xlu1 %245 }
 0x129   :  { %v243_v22 = vpop.permute.xlu0 %242  ;;  %v347_v50 = vrot.slane %v246_v21, %v1861_v41 }
 0x12a   :  { %v342_v53 = vrot.slane %v243_v22, %v1864_v43 }
 0x12c   :  { %v249_v23 = vpop.permute.xlu1 %248  ;;  %v349_v36 = vsel %vm348_vm0, %v347_v50, %v342_v53 }
 0x12d   :  { %v354_v57 = vrot.slane %v249_v23, %v1868_v45 }
 0x12f   :  { %v356_v5 = vsel %vm355_vm1, %v354_v57, %v349_v36 }
 0x130   :  { %v255_v32 = vpop.permute.xlu1 %254  ;;  %v252_v27 = vpop.permute.xlu0 %251 }
 0x131   :  { %v367_v48 = vrot.slane %v255_v32, %v1864_v43  ;;  %v361_v61 = vrot.slane %v252_v27, %v1873_v49 }
 0x133   :  { %v363_v9 = vsel %vm362_vm2, %v361_v61, %v356_v5 }
 0x134   :  { %v261_v28 = vpop.permute.xlu1 %260  ;;  %v258_v29 = vpop.permute.xlu0 %257 }
 0x135   :  { %v371_v44 = vrot.slane %v258_v29, %v1861_v41  ;;  %v376_v51 = vrot.slane %v261_v28, %v1868_v45 }
 0x137   :  { %v372_v54 = vsel %vm348_vm0, %v371_v44, %v367_v48 }
 0x138   :  { %v267_v33 = vpop.permute.xlu1 %266  ;;  %v264_v35 = vpop.permute.xlu0 %263  ;;  %v377_v0 = vsel %vm355_vm1, %v376_v51, %v372_v54 }
 0x139   :  { %v386_v52 = vrot.slane %v267_v33, %v1864_v43  ;;  %v381_v55 = vrot.slane %v264_v35, %v1873_v49 }
 0x13b   :  { %v382_v2 = vsel %vm362_vm2, %v381_v55, %v377_v0 }
 0x13c   :  { %v273_v39 = vpop.permute.xlu1 %272  ;;  %v270_v40 = vpop.permute.xlu0 %269  ;;  %v498_v12 = vsel %vm497_vm3, %v382_v2, %v363_v9 }
 0x13d   :  { %v390_v24 = vrot.slane %v270_v40, %v1861_v41  ;;  %v395_v56 = vrot.slane %v273_v39, %v1868_v45 }
 0x13f   :  { %v391_v25 = vsel %vm348_vm0, %v390_v24, %v386_v52 }
 0x140   :  { %v279_v46 = vpop.permute.xlu1 %278  ;;  %v276_v47 = vpop.permute.xlu0 %275  ;;  %v396_v4 = vsel %vm355_vm1, %v395_v56, %v391_v25 }
 0x141   :  { %v400_v58 = vrot.slane %v276_v47, %v1873_v49  ;;  %v405_v62 = vrot.slane %v279_v46, %v1864_v43 }
 0x143   :  { %v401_v8 = vsel %vm362_vm2, %v400_v58, %v396_v4 }
 0x144   :  { %v285_v59 = vpop.permute.xlu1 %284  ;;  %v282_v60 = vpop.permute.xlu0 %281  ;;  %v500_v15 = vsel %vm499_vm4, %v401_v8, %v498_v12 }
 0x145   :  { %v409_v63 = vrot.slane %v282_v60, %v1861_v41  ;;  %v414_v1 = vrot.slane %v285_v59, %v1868_v45 }
 0x147   :  { %v410_v3 = vsel %vm348_vm0, %v409_v63, %v405_v62 }
 0x148   :  { %v291_v6 = vpop.permute.xlu1 %290  ;;  %v288_v7 = vpop.permute.xlu0 %287  ;;  %v415_v11 = vsel %vm355_vm1, %v414_v1, %v410_v3 }
 0x149   :  { %v419_v10 = vrot.slane %v288_v7, %v1873_v49  ;;  %v424_v24 = vrot.slane %v291_v6, %v1864_v43 }
 0x14b   :  { %v420_v13 = vsel %vm362_vm2, %v419_v10, %v415_v11 }
 0x14c   :  { %v297_v16 = vpop.permute.xlu1 %296  ;;  %v294_v17 = vpop.permute.xlu0 %293  ;;  %v502_v18 = vsel %vm501_vm5, %v420_v13, %v500_v15 }
 0x14d   :  { %v509_v19 = vsel %vm508_vm6, %v502_v18, 0.0  ;;  %v428_v39 = vrot.slane %v294_v17, %v1861_v41  ;;  %v433_v50 = vrot.slane %v297_v16, %v1868_v45 }
 0x14e   :  { %510 = vadd.xlane.f32.xlu1 %v509_v19 }
 0x14f   :  { %v429_v55 = vsel %vm348_vm0, %v428_v39, %v424_v24 }
 0x150   :  { %v303_v21 = vpop.permute.xlu1 %302  ;;  %v300_v22 = vpop.permute.xlu0 %299  ;;  %v434_v63 = vsel %vm355_vm1, %v433_v50, %v429_v55 }
 0x151   :  { %v443_v40 = vrot.slane %v303_v21, %v1864_v43  ;;  %v438_v56 = vrot.slane %v300_v22, %v1873_v49 }
 0x153   :  { %v439_v36 = vsel %vm362_vm2, %v438_v56, %v434_v63 }
 0x154   :  { %v309_v23 = vpop.permute.xlu1 %308  ;;  %v306_v32 = vpop.permute.xlu0 %305 }
 0x155   :  { %v447_v33 = vrot.slane %v306_v32, %v1861_v41  ;;  %v452_v42 = vrot.slane %v309_v23, %v1868_v45 }
 0x157   :  { %v448_v46 = vsel %vm348_vm0, %v447_v33, %v443_v40 }
 0x158   :  { %v315_v27 = vpop.permute.xlu1 %314  ;;  %v312_v28 = vpop.permute.xlu0 %311  ;;  %v453_v58 = vsel %vm355_vm1, %v452_v42, %v448_v46 }
 0x159   :  { %v462_v44 = vrot.slane %v315_v27, %v1864_v43  ;;  %v457_v47 = vrot.slane %v312_v28, %v1873_v49 }
 0x15b   :  { %v458_v60 = vsel %vm362_vm2, %v457_v47, %v453_v58 }
 0x15c   :  { %v321_v29 = vpop.permute.xlu1 %320  ;;  %v318_v31 = vpop.permute.xlu0 %317  ;;  %v503_v3 = vsel %vm497_vm3, %v458_v60, %v439_v36 }
 0x15d   :  { %v466_v35 = vrot.slane %v318_v31, %v1861_v41  ;;  %v471_v48 = vrot.slane %v321_v29, %v1868_v45 }
 0x15f   :  { %v467_v51 = vsel %vm348_vm0, %v466_v35, %v462_v44 }
 0x160   :  { %v327_v37 = vpop.permute.xlu1 %326  ;;  %v324_v38 = vpop.permute.xlu0 %323  ;;  %v472_v62 = vsel %vm355_vm1, %v471_v48, %v467_v51 }
 0x161   :  { %v476_v52 = vrot.slane %v324_v38, %v1873_v49  ;;  %v481_v57 = vrot.slane %v327_v37, %v1864_v43 }
 0x163   :  { %v477_v1 = vsel %vm362_vm2, %v476_v52, %v472_v62 }
 0x164   :  { %v333_v53 = vpop.permute.xlu1 %332  ;;  %v330_v54 = vpop.permute.xlu0 %329  ;;  %v504_v4 = vsel %vm499_vm4, %v477_v1, %v503_v3 }
 0x165   :  { %v485_v25 = vrot.slane %v330_v54, %v1861_v41  ;;  %v490_v59 = vrot.slane %v333_v53, %v1868_v45 }
 0x167   :  { %v486_v61 = vsel %vm348_vm0, %v485_v25, %v481_v57 }
 0x168   :  { %v336_v0 = vpop.permute.xlu0 %335  ;;  %v491_v41 = vsel %vm355_vm1, %v490_v59, %v486_v61  ;;  %v1936_v7 = vpop.permute.xlu1 %577 }
 0x169   :  { %v495_v2 = vrot.slane %v336_v0, %v1873_v49 }
 0x16b   :  { %v496_v45 = vsel %vm362_vm2, %v495_v2, %v491_v41 }
 0x16c   :  { %v505_v5 = vsel %vm501_vm5, %v496_v45, %v504_v4  ;;  %v1938_v8 = vpop.permute.xlu1 %591  ;;  %v1942_v49 = vpop.permute.xlu0 %570 }
 0x16d   :  { %v512_v6 = vsel %vm508_vm6, %v505_v5, 0.0 }
 0x16e   :  { %513 = vadd.xlane.f32.xlu0 %v512_v6 }
 0x170   :  { %v1940_v9 = vpop.permute.xlu1 %605  ;;  %v1946_v11 = vpop.permute.xlu0 %584 }
 0x174   :  { %v1944_v10 = vpop.permute.xlu1 %619  ;;  %v1950_v13 = vpop.permute.xlu0 %598 }
 0x178   :  { %v1948_v12 = vpop.permute.xlu1 %633  ;;  %v1954_v16 = vpop.permute.xlu0 %612 }
 0x17c   :  { %v1952_v15 = vpop.permute.xlu1 %647  ;;  %v1958_v18 = vpop.permute.xlu0 %626 }
 0x180   :  { %v1956_v17 = vpop.permute.xlu1 %661  ;;  %v1962_v21 = vpop.permute.xlu0 %640 }
 0x184   :  { %v1960_v19 = vpop.permute.xlu1 %675  ;;  %v1966_v23 = vpop.permute.xlu0 %654 }
 0x188   :  { %v1964_v22 = vpop.permute.xlu1 %689  ;;  %v1970_v27 = vpop.permute.xlu0 %668 }
 0x18c   :  { %v1968_v32 = vpop.permute.xlu1 %703  ;;  %v1974_v29 = vpop.permute.xlu0 %682 }
 0x190   :  { %v1972_v28 = vpop.permute.xlu1 %717  ;;  %v1978_v33 = vpop.permute.xlu0 %696 }
 0x194   :  { %v1976_v31 = vpop.permute.xlu1 %731  ;;  %v1982_v37 = vpop.permute.xlu0 %710 }
 0x198   :  { %v1980_v35 = vpop.permute.xlu1 %745  ;;  %v1984_v39 = vpop.permute.xlu0 %724 }
 0x19c   :  { %v760_v38 = vpop.permute.xlu1 %759  ;;  %v1989_v24 = vpop.permute.xlu0 %738 }
 0x1a0   :  { %v753_v51 = vpop.permute.xlu0 %752 }
 0x1d7   :  { %v511_v40 = vpop.xlane.xlu1 %510 }
 0x1d8   :  { %v525_v42 = vadd.f32 %v1853_v34, %v511_v40 }
 0x1da   :  { %v1987_v44 = vmax.f32 %v525_v42, 0.0 }
 0x1dc   :  { %v793_v46 = vmul.f32 %v1848_v14, %v1987_v44  ;;  %v794_v47 = vmul.f32 %v1851_v30, %v1987_v44  ;;  %v796_v48 = vmul.f32 %v1855_v20, %v1987_v44  ;;  %v795_v50 = vmul.f32 %v1857_v26, %v1987_v44 }
 0x1dd   :  { %v2000_v52 = vmul.f32 %v753_v51, %v1987_v44  ;;  %v2003_v53 = vmul.f32 %v760_v38, %v1987_v44  ;;  %v798_v54 = vmul.f32 %v1936_v7, %v1987_v44  ;;  %v797_v55 = vmul.f32 %v1942_v49, %v1987_v44 }
 0x1de   :  { %925 = vperm.xlu1 %1648, %v794_v47   ;;  %922 = vperm.xlu0 %1647, %v793_v46   ;;  %v800_v56 = vmul.f32 %v1938_v8, %v1987_v44  ;;  %v799_v57 = vmul.f32 %v1946_v11, %v1987_v44  ;;  %v802_v25 = vmul.f32 %v1940_v9, %v1987_v44 }
 0x1df   :  { %v801_v58 = vmul.f32 %v1950_v13, %v1987_v44  ;;  %v804_v59 = vmul.f32 %v1944_v10, %v1987_v44  ;;  %v803_v60 = vmul.f32 %v1954_v16, %v1987_v44  ;;  %v806_v61 = vmul.f32 %v1948_v12, %v1987_v44 }
 0x1e0   :  { %v805_v62 = vmul.f32 %v1958_v18, %v1987_v44  ;;  %v808_v63 = vmul.f32 %v1952_v15, %v1987_v44  ;;  %v807_v1 = vmul.f32 %v1962_v21, %v1987_v44  ;;  %v810_v2 = vmul.f32 %v1956_v17, %v1987_v44 }
 0x1e1   :  { %v809_v41 = vmul.f32 %v1966_v23, %v1987_v44  ;;  %v812_v45 = vmul.f32 %v1960_v19, %v1987_v44  ;;  %v811_v4 = vmul.f32 %v1970_v27, %v1987_v44  ;;  %v814_v6 = vmul.f32 %v1964_v22, %v1987_v44 }
 0x1e2   :  { %931 = vperm.xlu1 %1648, %v796_v48   ;;  %928 = vperm.xlu0 %1647, %v795_v50   ;;  %v813_v40 = vmul.f32 %v1974_v29, %v1987_v44  ;;  %v817_v42 = vmul.f32 %v1982_v37, %v1987_v44  ;;  %v815_v46 = vmul.f32 %v1978_v33, %v1987_v44 }
 0x1e3   :  { %v818_v47 = vmul.f32 %v1972_v28, %v1987_v44 }
 0x1e6   :  { %937 = vperm.xlu1 %1648, %v798_v54   ;;  %934 = vperm.xlu0 %1647, %v797_v55  }
 0x1ea   :  { %943 = vperm.xlu1 %1648, %v800_v56   ;;  %940 = vperm.xlu0 %1647, %v799_v57   ;;  %v820_v56 = vmul.f32 %v1976_v31, %v1987_v44 }
 0x1ee   :  { %949 = vperm.xlu1 %1648, %v802_v25   ;;  %946 = vperm.xlu0 %1647, %v801_v58   ;;  %v822_v25 = vmul.f32 %v1980_v35, %v1987_v44 }
 0x1f2   :  { %955 = vperm.xlu1 %1648, %v804_v59   ;;  %952 = vperm.xlu0 %1647, %v803_v60  }
 0x1f6   :  { %961 = vperm.xlu1 %1648, %v806_v61   ;;  %958 = vperm.xlu0 %1647, %v805_v62  }
 0x1f7   :  { %v514_v0 = vpop.xlane.xlu0 %513 }
 0x1f8   :  { %v526_v36 = vadd.f32 %v1853_v34, %v514_v0 }
 0x1fa   :  { %967 = vperm.xlu1 %1648, %v808_v63   ;;  %964 = vperm.xlu0 %1647, %v807_v1   ;;  %v2034_v3 = vmax.f32 %v526_v36, 0.0 }
 0x1fc   :  { %v2041_v34 = vmul.f32 %v753_v51, %v2034_v3  ;;  %v2044_v5 = vmul.f32 %v760_v38, %v2034_v3  ;;  %v825_v38 = vmul.f32 %v1848_v14, %v2034_v3  ;;  %v833_v48 = vmul.f32 %v1950_v13, %v2034_v3 }
 0x1fd   :  { %v826_v50 = vmul.f32 %v1851_v30, %v2034_v3  ;;  %v841_v51 = vmul.f32 %v1966_v23, %v2034_v3  ;;  %v834_v54 = vmul.f32 %v1940_v9, %v2034_v3  ;;  %v849_v14 = vmul.f32 %v1982_v37, %v2034_v3 }
 0x1fe   :  { %973 = vperm.xlu1 %1648, %v810_v2   ;;  %970 = vperm.xlu0 %1647, %v809_v41   ;;  %v842_v55 = vmul.f32 %v1956_v17, %v2034_v3  ;;  %v819_v30 = vmul.f32 %v1984_v39, %v1987_v44  ;;  %v850_v13 = vmul.f32 %v1972_v28, %v2034_v3 }
 0x1ff   :  { %v835_v9 = vmul.f32 %v1954_v16, %v2034_v3  ;;  %v827_v23 = vmul.f32 %v1857_v26, %v2034_v3  ;;  %v851_v17 = vmul.f32 %v1984_v39, %v2034_v3  ;;  %v843_v37 = vmul.f32 %v1970_v27, %v2034_v3 }
 0x200   :  { %v828_v28 = vmul.f32 %v1855_v20, %v2034_v3  ;;  %v844_v26 = vmul.f32 %v1960_v19, %v2034_v3  ;;  %v836_v16 = vmul.f32 %v1944_v10, %v2034_v3  ;;  %v821_v27 = vmul.f32 %v1989_v24, %v1987_v44 }
 0x201   :  { %v852_v39 = vmul.f32 %v1976_v31, %v2034_v3  ;;  %v837_v20 = vmul.f32 %v1958_v18, %v2034_v3  ;;  %v829_v57 = vmul.f32 %v1942_v49, %v2034_v3  ;;  %v853_v10 = vmul.f32 %v1989_v24, %v2034_v3 }
 0x202   :  { %979 = vperm.xlu1 %1648, %v812_v45   ;;  %976 = vperm.xlu0 %1647, %v811_v4   ;;  %v845_v19 = vmul.f32 %v1974_v29, %v2034_v3  ;;  %v830_v31 = vmul.f32 %v1936_v7, %v2034_v3  ;;  %v846_v49 = vmul.f32 %v1964_v22, %v2034_v3 }
 0x203   :  { %v838_v18 = vmul.f32 %v1948_v12, %v2034_v3  ;;  %v854_v29 = vmul.f32 %v1980_v35, %v2034_v3  ;;  %v839_v7 = vmul.f32 %v1962_v21, %v2034_v3  ;;  %v831_v24 = vmul.f32 %v1946_v11, %v2034_v3 }
 0x204   :  { %v847_v22 = vmul.f32 %v1978_v33, %v2034_v3  ;;  %v816_v12 = vmul.f32 %v1968_v32, %v1987_v44  ;;  %v840_v21 = vmul.f32 %v1952_v15, %v2034_v3  ;;  %v832_v11 = vmul.f32 %v1938_v8, %v2034_v3 }
 0x205   :  { %v848_v33 = vmul.f32 %v1968_v32, %v2034_v3 }
 0x206   :  { %985 = vperm.xlu1 %1648, %v814_v6   ;;  %982 = vperm.xlu0 %1647, %v813_v40  }
 0x20a   :  { %994 = vperm.xlu1 %1648, %v817_v42   ;;  %988 = vperm.xlu0 %1647, %v815_v46  }
 0x20e   :  { %1018 = vperm.xlu1 %1648, %v825_v38   ;;  %997 = vperm.xlu0 %1647, %v818_v47  }
 0x212   :  { %1042 = vperm.xlu1 %1648, %v833_v48   ;;  %1021 = vperm.xlu0 %1647, %v826_v50  }
 0x216   :  { %1066 = vperm.xlu1 %1648, %v841_v51   ;;  %1045 = vperm.xlu0 %1647, %v834_v54  }
 0x21a   :  { %1090 = vperm.xlu1 %1648, %v849_v14   ;;  %1069 = vperm.xlu0 %1647, %v842_v55  }
 0x21e   :  { %1000 = vperm.xlu1 %1648, %v819_v30   ;;  %1093 = vperm.xlu0 %1647, %v850_v13  }
 0x222   :  { %1048 = vperm.xlu1 %1648, %v835_v9   ;;  %1024 = vperm.xlu0 %1647, %v827_v23  }
 0x226   :  { %1096 = vperm.xlu1 %1648, %v851_v17   ;;  %1072 = vperm.xlu0 %1647, %v843_v37  }
 0x22a   :  { %1027 = vperm.xlu1 %1648, %v828_v28   ;;  %1003 = vperm.xlu0 %1647, %v820_v56  }
 0x22e   :  { %1075 = vperm.xlu1 %1648, %v844_v26   ;;  %1051 = vperm.xlu0 %1647, %v836_v16  }
 0x232   :  { %1006 = vperm.xlu1 %1648, %v821_v27   ;;  %1099 = vperm.xlu0 %1647, %v852_v39  }
 0x236   :  { %1054 = vperm.xlu1 %1648, %v837_v20   ;;  %1030 = vperm.xlu0 %1647, %v829_v57  }
 0x23a   :  { %1102 = vperm.xlu1 %1648, %v853_v10   ;;  %1078 = vperm.xlu0 %1647, %v845_v19  }
 0x23e   :  { %1033 = vperm.xlu1 %1648, %v830_v31   ;;  %1009 = vperm.xlu0 %1647, %v822_v25  }
 0x242   :  { %1081 = vperm.xlu1 %1648, %v846_v49   ;;  %1057 = vperm.xlu0 %1647, %v838_v18  }
 0x246   :  { %1012 = vperm.xlu1 %1648, %v2000_v52   ;;  %1105 = vperm.xlu0 %1647, %v854_v29  }
 0x24a   :  { %1060 = vperm.xlu1 %1648, %v839_v7   ;;  %1036 = vperm.xlu0 %1647, %v831_v24  }
 0x24e   :  { %1108 = vperm.xlu1 %1648, %v2041_v34   ;;  %1084 = vperm.xlu0 %1647, %v847_v22  }
 0x252   :  { %1015 = vperm.xlu1 %1648, %v2003_v53   ;;  %991 = vperm.xlu0 %1647, %v816_v12  }
 0x256   :  { %1063 = vperm.xlu1 %1648, %v840_v21   ;;  %1039 = vperm.xlu0 %1647, %v832_v11  }
 0x259   :  { %v926_v35 = vpop.permute.xlu1 %925  ;;  %v923_v52 = vpop.permute.xlu0 %922 }
 0x25a   :  { %1111 = vperm.xlu1 %1648, %v2044_v5   ;;  %1087 = vperm.xlu0 %1647, %v848_v33   ;;  %v1120_v15 = vrot.slane %v926_v35, %v1864_v43  ;;  %v1116_v61 = vrot.slane %v923_v52, %v1864_v43 }
 0x25c   :  { %v1369_v32 = vsel %vm497_vm3, %v1120_v15, %v1116_v61 }
 0x25d   :  { %v932_v44 = vpop.permute.xlu1 %931  ;;  %v929_v58 = vpop.permute.xlu0 %928 }
 0x25e   :  { %v1124_v62 = vrot.slane %v929_v58, %v1864_v43  ;;  %v1128_v0 = vrot.slane %v932_v44, %v1864_v43 }
 0x260   :  { %v1370_v36 = vsel %vm499_vm4, %v1124_v62, %v1369_v32 }
 0x261   :  { %v938_v53 = vpop.permute.xlu1 %937  ;;  %v935_v59 = vpop.permute.xlu0 %934  ;;  %v1371_v34 = vsel %vm501_vm5, %v1128_v0, %v1370_v36 }
 0x262   :  { %v1132_v2 = vrot.slane %v935_v59, %v1864_v43  ;;  %v1136_v4 = vrot.slane %v938_v53, %v1864_v43 }
 0x264   :  { %v1373_v6 = vsel %vm1372_vm7, %v1132_v2, %v1371_v34 }
 0x265   :  { %v944_v60 = vpop.permute.xlu1 %943  ;;  %v941_v8 = vpop.permute.xlu0 %940  ;;  %v1375_v54 = vsel %vm1374_vm8, %v1136_v4, %v1373_v6 }
 0x266   :  { %v1140_v40 = vrot.slane %v941_v8, %v1864_v43  ;;  %v1144_v50 = vrot.slane %v944_v60, %v1864_v43 }
 0x268   :  { %v1377_v55 = vsel %vm1376_vm9, %v1140_v40, %v1375_v54 }
 0x269   :  { %v950_v63 = vpop.permute.xlu1 %949  ;;  %v947_v1 = vpop.permute.xlu0 %946  ;;  %v1379_v28 = vsel %vm1378_vm10, %v1144_v50, %v1377_v55 }
 0x26a   :  { %v1152_v41 = vrot.slane %v950_v63, %v1864_v43  ;;  %v1148_v3 = vrot.slane %v947_v1, %v1864_v43  ;;  %v1438_v27 = vsel %vm1437_vm11, %v1379_v28, 0.0 }
 0x26c   :  { %v1380_v46 = vsel %vm497_vm3, %v1152_v41, %v1148_v3 }
 0x26d   :  { %v956_v45 = vpop.permute.xlu1 %955  ;;  %v953_v5 = vpop.permute.xlu0 %952 }
 0x26e   :  { %v1156_v42 = vrot.slane %v953_v5, %v1864_v43  ;;  %v1160_v38 = vrot.slane %v956_v45, %v1864_v43 }
 0x270   :  { %v1381_v47 = vsel %vm499_vm4, %v1156_v42, %v1380_v46 }
 0x271   :  { %v962_v48 = vpop.permute.xlu1 %961  ;;  %v959_v51 = vpop.permute.xlu0 %958  ;;  %v1382_v13 = vsel %vm501_vm5, %v1160_v38, %v1381_v47 }
 0x272   :  { %v1164_v14 = vrot.slane %v959_v51, %v1864_v43  ;;  %v1168_v30 = vrot.slane %v962_v48, %v1864_v43 }
 0x274   :  { %v1383_v9 = vsel %vm1372_vm7, %v1164_v14, %v1382_v13 }
 0x275   :  { %v968_v23 = vpop.permute.xlu1 %967  ;;  %v965_v37 = vpop.permute.xlu0 %964  ;;  %v1384_v26 = vsel %vm1374_vm8, %v1168_v30, %v1383_v9 }
 0x276   :  { %v1176_v17 = vrot.slane %v968_v23, %v1864_v43  ;;  %v1172_v56 = vrot.slane %v965_v37, %v1864_v43 }
 0x278   :  { %v1385_v39 = vsel %vm1376_vm9, %v1172_v56, %v1384_v26 }
 0x279   :  { %v974_v16 = vpop.permute.xlu1 %973  ;;  %1439 = vadd.xlane.f32.xlu0 %v1438_v27  ;;  %v971_v57 = vpop.permute.xlu0 %970  ;;  %v1386_v10 = vsel %vm1378_vm10, %v1176_v17, %v1385_v39 }
 0x27a   :  { %v1184_v20 = vrot.slane %v974_v16, %v1864_v43  ;;  %v1180_v19 = vrot.slane %v971_v57, %v1864_v43  ;;  %v1441_v49 = vsel %vm1437_vm11, %v1386_v10, 0.0 }
 0x27c   :  { %v1387_v31 = vsel %vm497_vm3, %v1184_v20, %v1180_v19 }
 0x27d   :  { %v980_v25 = vpop.permute.xlu1 %979  ;;  %v977_v29 = vpop.permute.xlu0 %976 }
 0x27e   :  { %v1192_v18 = vrot.slane %v980_v25, %v1864_v43  ;;  %1442 = vadd.xlane.f32.xlu1 %v1441_v49  ;;  %v1188_v7 = vrot.slane %v977_v29, %v1864_v43 }
 0x280   :  { %v1388_v24 = vsel %vm499_vm4, %v1188_v7, %v1387_v31 }
 0x281   :  { %v986_v22 = vpop.permute.xlu1 %985  ;;  %v1389_v21 = vsel %vm501_vm5, %v1192_v18, %v1388_v24  ;;  %v983_v11 = vpop.permute.xlu0 %982 }
 0x282   :  { %v1200_v12 = vrot.slane %v986_v22, %v1864_v43  ;;  %v1196_v33 = vrot.slane %v983_v11, %v1864_v43 }
 0x284   :  { %v1390_v35 = vsel %vm1372_vm7, %v1196_v33, %v1389_v21 }
 0x285   :  { %v995_v52 = vpop.permute.xlu1 %994  ;;  %v989_v44 = vpop.permute.xlu0 %988  ;;  %v1391_v58 = vsel %vm1374_vm8, %v1200_v12, %v1390_v35 }
 0x286   :  { %v1204_v53 = vrot.slane %v989_v44, %v1864_v43  ;;  %v1212_v61 = vrot.slane %v995_v52, %v1864_v43 }
 0x288   :  { %v2175_v60 = vsel %vm1376_vm9, %v1204_v53, %v1391_v58 }
 0x289   :  { %v1019_v59 = vpop.permute.xlu1 %1018  ;;  %v998_v15 = vpop.permute.xlu0 %997 }
 0x28a   :  { %v1216_v8 = vrot.slane %v998_v15, %v1864_v43  ;;  %v1244_v0 = vrot.slane %v1019_v59, %v1864_v43 }
 0x28c   :  { %v2180_v62 = vsel %vm497_vm3, %v1216_v8, %v1212_v61 }
 0x28d   :  { %v1043_v63 = vpop.permute.xlu1 %1042  ;;  %v1022_v32 = vpop.permute.xlu0 %1021 }
 0x28e   :  { %v1248_v1 = vrot.slane %v1022_v32, %v1864_v43  ;;  %v1276_v7 = vrot.slane %v1043_v63, %v1864_v43 }
 0x290   :  { %v2185_v36 = vsel %vm497_vm3, %v1248_v1, %v1244_v0 }
 0x291   :  { %v2187_v2 = vpop.permute.xlu1 %1066  ;;  %v1046_v41 = vpop.permute.xlu0 %1045 }
 0x292   :  { %v1280_v29 = vrot.slane %v1046_v41, %v1864_v43  ;;  %v1308_v52 = vrot.slane %v2187_v2, %v1864_v43 }
 0x294   :  { %v1408_v44 = vsel %vm497_vm3, %v1280_v29, %v1276_v7 }
 0x295   :  { %v1091_v3 = vpop.permute.xlu1 %1090  ;;  %v2189_v45 = vpop.permute.xlu0 %1069 }
 0x296   :  { %v1340_v5 = vrot.slane %v1091_v3, %v1864_v43  ;;  %v1312_v58 = vrot.slane %v2189_v45, %v1864_v43 }
 0x299   :  { %v1001_v4 = vpop.permute.xlu1 %1000  ;;  %v1094_v34 = vpop.permute.xlu0 %1093 }
 0x29a   :  { %v1344_v6 = vrot.slane %v1094_v34, %v1864_v43  ;;  %v1220_v24 = vrot.slane %v1001_v4, %v1864_v43 }
 0x29c   :  { %v1422_v40 = vsel %vm497_vm3, %v1344_v6, %v1340_v5  ;;  %v1395_v63 = vsel %vm499_vm4, %v1220_v24, %v2180_v62 }
 0x29d   :  { %v1049_v42 = vpop.permute.xlu1 %1048  ;;  %v1025_v46 = vpop.permute.xlu0 %1024 }
 0x29e   :  { %v1284_v22 = vrot.slane %v1049_v42, %v1864_v43  ;;  %v1252_v21 = vrot.slane %v1025_v46, %v1864_v43 }
 0x2a0   :  { %v1409_v32 = vsel %vm499_vm4, %v1284_v22, %v1408_v44  ;;  %v1402_v41 = vsel %vm499_vm4, %v1252_v21, %v2185_v36 }
 0x2a1   :  { %v1097_v38 = vpop.permute.xlu1 %1096  ;;  %v2195_v48 = vpop.permute.xlu0 %1072 }
 0x2a2   :  { %v1348_v47 = vrot.slane %v1097_v38, %v1864_v43  ;;  %v1316_v3 = vrot.slane %v2195_v48, %v1864_v43 }
 0x2a4   :  { %v1423_v50 = vsel %vm499_vm4, %v1348_v47, %v1422_v40 }
 0x2a5   :  { %v1028_v51 = vpop.permute.xlu1 %1027  ;;  %v1004_v54 = vpop.permute.xlu0 %1003 }
 0x2a6   :  { %v1224_v11 = vrot.slane %v1004_v54, %v1864_v43  ;;  %v1256_v59 = vrot.slane %v1028_v51, %v1864_v43 }
 0x2a8   :  { %v1396_v45 = vsel %vm501_vm5, %v1224_v11, %v1395_v63  ;;  %v1403_v42 = vsel %vm501_vm5, %v1256_v59, %v1402_v41 }
 0x2a9   :  { %v2198_v14 = vpop.permute.xlu1 %1075  ;;  %v1052_v55 = vpop.permute.xlu0 %1051 }
 0x2aa   :  { %v1288_v53 = vrot.slane %v1052_v55, %v1864_v43 }
 0x2ac   :  { %v1410_v62 = vsel %vm501_vm5, %v1288_v53, %v1409_v32 }
 0x2ad   :  { %v1007_v30 = vpop.permute.xlu1 %1006  ;;  %v1100_v13 = vpop.permute.xlu0 %1099 }
 0x2ae   :  { %v1352_v9 = vrot.slane %v1100_v13, %v1864_v43  ;;  %v1228_v15 = vrot.slane %v1007_v30, %v1864_v43 }
 0x2b0   :  { %v1424_v23 = vsel %vm501_vm5, %v1352_v9, %v1423_v50  ;;  %v1397_v36 = vsel %vm1372_vm7, %v1228_v15, %v1396_v45 }
 0x2b1   :  { %v1055_v17 = vpop.permute.xlu1 %1054  ;;  %v2202_v37 = vpop.permute.xlu0 %1030 }
 0x2b2   :  { %v1292_v61 = vrot.slane %v1055_v17, %v1864_v43  ;;  %v1260_v38 = vrot.slane %v2202_v37, %v1864_v43  ;;  %v1320_v17 = vrot.slane %v2198_v14, %v1864_v43 }
 0x2b4   :  { %v1411_v46 = vsel %vm1372_vm7, %v1292_v61, %v1410_v62 }
 0x2b5   :  { %v1103_v28 = vpop.permute.xlu1 %1102  ;;  %v2205_v26 = vpop.permute.xlu0 %1078 }
 0x2b6   :  { %v1356_v56 = vrot.slane %v1103_v28, %v1864_v43 }
 0x2b8   :  { %v1425_v16 = vsel %vm1372_vm7, %v1356_v56, %v1424_v23  ;;  %v1404_v56 = vsel %vm1372_vm7, %v1260_v38, %v1403_v42 }
 0x2b9   :  { %v2208_v27 = vpop.permute.xlu1 %1033  ;;  %v1010_v39 = vpop.permute.xlu0 %1009 }
 0x2ba   :  { %v1232_v0 = vrot.slane %v1010_v39, %v1864_v43  ;;  %v1264_v47 = vrot.slane %v2208_v27, %v1864_v43  ;;  %v1415_v39 = vsel %vm497_vm3, %v1312_v58, %v1308_v52 }
 0x2bc   :  { %v1398_v48 = vsel %vm1374_vm8, %v1232_v0, %v1397_v36 }
 0x2bd   :  { %v2210_v20 = vpop.permute.xlu1 %1081  ;;  %v1058_v57 = vpop.permute.xlu0 %1057 }
 0x2be   :  { %v1296_v1 = vrot.slane %v1058_v57, %v1864_v43  ;;  %v1405_v57 = vsel %vm1374_vm8, %v1264_v47, %v1404_v56  ;;  %v1328_v14 = vrot.slane %v2210_v20, %v1864_v43 }
 0x2c0   :  { %v1412_v50 = vsel %vm1374_vm8, %v1296_v1, %v1411_v46 }
 0x2c1   :  { %v1013_v10 = vpop.permute.xlu1 %1012  ;;  %v1106_v19 = vpop.permute.xlu0 %1105 }
 0x2c2   :  { %v1360_v31 = vrot.slane %v1106_v19, %v1864_v43  ;;  %v1236_v4 = vrot.slane %v1013_v10, %v1864_v43  ;;  %v1416_v19 = vsel %vm499_vm4, %v1316_v3, %v1415_v39 }
 0x2c4   :  { %v1426_v25 = vsel %vm1374_vm8, %v1360_v31, %v1425_v16  ;;  %v1399_v23 = vsel %vm1376_vm9, %v1236_v4, %v1398_v48  ;;  %v1324_v16 = vrot.slane %v2205_v26, %v1864_v43 }
 0x2c5   :  { %v1061_v49 = vpop.permute.xlu1 %1060  ;;  %v2214_v18 = vpop.permute.xlu0 %1036 }
 0x2c6   :  { %v1300_v5 = vrot.slane %v1061_v49, %v1864_v43  ;;  %v1268_v55 = vrot.slane %v2214_v18, %v1864_v43  ;;  %v1417_v18 = vsel %vm501_vm5, %v1320_v17, %v1416_v19 }
 0x2c7   :  { %v1418_v7 = vsel %vm1372_vm7, %v1324_v16, %v1417_v18 }
 0x2c8   :  { %v1413_v28 = vsel %vm1376_vm9, %v1300_v5, %v1412_v50  ;;  %v1406_v49 = vsel %vm1376_vm9, %v1268_v55, %v1405_v57  ;;  %v1419_v24 = vsel %vm1374_vm8, %v1328_v14, %v1418_v7  ;;  %v1681_v7 = vld [vmem:[#allocation2 + $0x10] sm:$0xff] }
 0x2c9   :  { %v1109_v12 = vpop.permute.xlu1 %1108  ;;  %v2223_v35 = vpop.permute.xlu0 %1084 }
 0x2ca   :  { %v1364_v33 = vrot.slane %v1109_v12, %v1864_v43  ;;  %v1332_v31 = vrot.slane %v2223_v35, %v1864_v43 }
 0x2cc   :  { %v2235_v8 = vsel %vm1376_vm9, %v1364_v33, %v1426_v25  ;;  %v1420_v12 = vsel %vm1376_vm9, %v1332_v31, %v1419_v24  ;;  %v1633_v33 = vld [vmem:[%s2313_s4] ss:$0 sm:$0xff]  ;;  %s1745_s4 = smov [#allocation5]  }
 0x2cd   :  { %v1016_v2 = vpop.permute.xlu1 %1015  ;;  %v992_v34 = vpop.permute.xlu0 %991  ;;  %s1620_s10 = sshll.u32 %s1745_s4, 4  ;;  %s1621_s10 = int_to_ptr.vmem [resolvable:$true] %s1620_s10 }
 0x2ce   :  { %v1240_v6 = vrot.slane %v1016_v2, %v1864_v43  ;;  %v1208_v40 = vrot.slane %v992_v34, %v1864_v43  ;;  %s1717_s11 = scalar_lea.vmem %s1621_s10, 2048  ;;  %p1722_p6 = scmp.lt.s32.totalorder %s1621_s10, %s1621_s10 }
 0x2cf   :  { %p1718_p5 = scmp.ne.s32.totalorder %s1621_s10, %s1717_s11  ;;  %p1723_p7 = scmp.lt.s32.totalorder %s1717_s11, %s1717_s11 }
 0x2d0   :  { %v1393_v54 = vsel %vm1378_vm10, %v1208_v40, %v2175_v60  ;;  %v1400_v60 = vsel %vm1378_vm10, %v1240_v6, %v1399_v23 }
 0x2d1   :  { %v1064_v51 = vpop.permute.xlu1 %1063  ;;  %v1040_v13 = vpop.permute.xlu0 %1039  ;;  %v1444_v9 = vsel %vm1437_vm11, %v1393_v54, 0.0  ;;  %v1447_v26 = vsel %vm1437_vm11, %v1400_v60, 0.0  ;;  %p1724_p8 = por %p1723_p7, %p1722_p6 }
 0x2d2   :  { %v1304_v30 = vrot.slane %v1064_v51, %v1864_v43  ;;  %v1272_v37 = vrot.slane %v1040_v13, %v1864_v43  ;;  %1445 = vadd.xlane.f32.xlu0 %v1444_v9 }
 0x2d3   :  { %p1725_p9 = pnand %p1724_p8, %p1718_p5 }
 0x2d4   :  { %v1414_v27 = vsel %vm1378_vm10, %v1304_v30, %v1413_v28  ;;  %v1407_v20 = vsel %vm1378_vm10, %v1272_v37, %v1406_v49 }
 0x2d5   :  { %v1453_v10 = vsel %vm1437_vm11, %v1414_v27, 0.0  ;;  %v1088_v25 = vpop.permute.xlu0 %1087  ;;  %v1450_v22 = vsel %vm1437_vm11, %v1407_v20, 0.0  ;;  %v1112_v35 = vpop.permute.xlu1 %1111 }
 0x2d6   :  { %1454 = vadd.xlane.f32.xlu1 %v1453_v10  ;;  %v1336_v29 = vrot.slane %v1088_v25, %v1864_v43  ;;  %1448 = vadd.xlane.f32.xlu0 %v1447_v26  ;;  %v1368_v52 = vrot.slane %v1112_v35, %v1864_v43  ;;  %v1684_v35 = vld [vmem:[#allocation2 + $0x8] sm:$0xff] }
 0x2d8   :  { %v1421_v21 = vsel %vm1378_vm10, %v1336_v29, %v1420_v12  ;;  %v1428_v44 = vsel %vm1378_vm10, %v1368_v52, %v2235_v8 }
 0x2d9   :  { %v1456_v11 = vsel %vm1437_vm11, %v1421_v21, 0.0  ;;  %v1459_v58 = vsel %vm1437_vm11, %v1428_v44, 0.0 }
 0x2da   :  { %1451 = vadd.xlane.f32.xlu0 %v1450_v22  ;;  %v1682_v22 = vld [vmem:[#allocation2 + $0x18] sm:$0xff] }
 0x2de   :  { %1457 = vadd.xlane.f32.xlu0 %v1456_v11  ;;  %v1683_v11 = vld [vmem:[#allocation2] sm:$0xff] }
 0x2e7   :  { %1473 = vbcast.lane.b32.xlu1 %v1633_v33, 264 }
 0x2eb   :  { %1477 = vbcast.lane.b32.xlu1 %v1633_v33, 272 }
 0x2f4   :  { %1469 = vbcast.lane.b32.xlu0 %v1633_v33, 256 }
 0x302   :  { %v1440_v53 = vpop.xlane.xlu0 %1439 }
 0x307   :  { %v1443_v59 = vpop.xlane.xlu1 %1442 }
 0x30f   :  { %1460 = vadd.xlane.f32.xlu1 %v1459_v58  ;;  %v1685_v58 = vld [vmem:[#allocation2 + $0x20] sm:$0xff] }
 0x320   :  { %1481 = vbcast.lane.b32.xlu1 %v1633_v33, 280 }
 0x35b   :  { %v1446_v15 = vpop.xlane.xlu0 %1445 }
 0x35f   :  { %v1455_v61 = vpop.xlane.xlu1 %1454  ;;  %v1449_v63 = vpop.xlane.xlu0 %1448 }
 0x363   :  { %v1474_v32 = vpop.permute.xlu1 %1473  ;;  %v1452_v1 = vpop.xlane.xlu0 %1451 }
 0x364   :  { %v1488_v0 = vadd.f32 %v1474_v32, %v1443_v59  ;;  %v1492_v17 = vadd.f32 %v1474_v32, %v1455_v61  ;;  %v1686_v59 = vld [vmem:[#allocation2 + $0x28] sm:$0xff] }
 0x366   :  { %v1635_v2 = vmul.f32 -1.442695, %v1488_v0  ;;  %v1639_v60 = vmul.f32 -1.442695, %v1492_v17  ;;  %v1688_v0 = vld [vmem:[#allocation2 + $0x48] sm:$0xff] }
 0x367   :  { %v1478_v41 = vpop.permute.xlu1 %1477  ;;  %v1458_v43 = vpop.xlane.xlu0 %1457 }
 0x368   :  { %1649 = vpow2.f32 %v1635_v2  ;;  %v1489_v3 = vadd.f32 %v1478_v41, %v1446_v15  ;;  %v1493_v5 = vadd.f32 %v1478_v41, %v1458_v43  ;;  %v1689_v41 = vld [vmem:[#allocation2 + $0x60] sm:$0xff]  ;;  %v1690_v43 = vld [vmem:[#allocation2 + $0x68] sm:$0xff] }
 0x36a   :  { %v1636_v45 = vmul.f32 -1.442695, %v1489_v3  ;;  %v1640_v42 = vmul.f32 -1.442695, %v1493_v5 }
 0x36b   :  { %v1470_v4 = vpop.permute.xlu0 %1469 }
 0x36c   :  { %v1487_v8 = vadd.f32 %v1470_v4, %v1440_v53  ;;  %v1491_v34 = vadd.f32 %v1470_v4, %v1452_v1  ;;  %1651 = vpow2.f32 %v1636_v45 }
 0x36e   :  { %v1634_v62 = vmul.f32 -1.442695, %v1487_v8  ;;  %v1638_v6 = vmul.f32 -1.442695, %v1491_v34  ;;  %v1691_v8 = vld [vmem:[#allocation2 + $0x30] sm:$0xff] }
 0x370   :  { %1653 = vpow2.f32 %v1634_v62  ;;  %v1692_v62 = vld [vmem:[#allocation2 + $0x38] sm:$0xff] }
 0x371   :  { %1655 = vpow2.f32 %v1638_v6 }
 0x375   :  { %v1650_v40 = vpop.eup %1649 }
 0x376   :  { %v1520_v36 = vadd.f32 1.0, %v1650_v40  ;;  %v1693_v40 = vld [vmem:[#allocation2 + $0x50] sm:$0xff] }
 0x378   :  { %1657 = vrcp.f32 %v1520_v36  ;;  %v1694_v36 = vld [vmem:[#allocation2 + $0x58] sm:$0xff] }
 0x379   :  { %1659 = vpow2.f32 %v1640_v42  ;;  %v1652_v46 = vpop.eup %1651 }
 0x37a   :  { %v1521_v48 = vadd.f32 1.0, %v1652_v46 }
 0x37d   :  { %v1654_v38 = vpop.eup %1653 }
 0x37e   :  { %v1519_v47 = vadd.f32 1.0, %v1654_v38  ;;  %v1656_v50 = vpop.eup %1655 }
 0x37f   :  { %v1523_v54 = vadd.f32 1.0, %v1656_v50  ;;  %v1696_v50 = vld [vmem:[#allocation2 + $0x78] sm:$0xff] }
 0x380   :  { %1661 = vrcp.f32 %v1519_v47  ;;  %v1695_v47 = vld [vmem:[#allocation2 + $0x70] sm:$0xff] }
 0x381   :  { %1663 = vrcp.f32 %v1521_v48 }
 0x382   :  { %1665 = vrcp.f32 %v1523_v54 }
 0x385   :  { %v1658_v51 = vpop.eup %1657 }
 0x386   :  { %v1660_v55 = vpop.eup %1659  ;;  %1550 = vperm.xlu1 %1648, %v1658_v51  }
 0x387   :  { %v1525_v30 = vadd.f32 1.0, %v1660_v55 }
 0x389   :  { %1667 = vrcp.f32 %v1525_v30 }
 0x38a   :  { %1669 = vpow2.f32 %v1639_v60 }
 0x38d   :  { %v1662_v13 = vpop.eup %1661 }
 0x38e   :  { %1545 = vperm.xlu0 %1647, %v1662_v13   ;;  %v1664_v9 = vpop.eup %1663 }
 0x38f   :  { %v1666_v23 = vpop.eup %1665 }
 0x392   :  { %1555 = vperm.xlu0 %1647, %v1664_v9  }
 0x396   :  { %1565 = vperm.xlu0 %1647, %v1666_v23   ;;  %v1668_v28 = vpop.eup %1667 }
 0x397   :  { %v1670_v14 = vpop.eup %1669 }
 0x398   :  { %v1461_v37 = vpop.xlane.xlu1 %1460  ;;  %v1524_v31 = vadd.f32 1.0, %v1670_v14 }
 0x39a   :  { %1575 = vperm.xlu0 %1647, %v1668_v28  }
 0x39c   :  { %v1482_v56 = vpop.permute.xlu1 %1481 }
 0x39d   :  { %v1490_v16 = vadd.f32 %v1482_v56, %v1449_v63  ;;  %v1494_v27 = vadd.f32 %v1482_v56, %v1461_v37  ;;  %v1687_v63 = vld [vmem:[#allocation2 + $0x40] sm:$0xff] }
 0x39f   :  { %v1637_v39 = vmul.f32 -1.442695, %v1490_v16  ;;  %v1641_v57 = vmul.f32 -1.442695, %v1494_v27 }
 0x3a1   :  { %1671 = vpow2.f32 %v1637_v39 }
 0x3a2   :  { %1673 = vpow2.f32 %v1641_v57 }
 0x3ae   :  { %v1672_v10 = vpop.eup %1671 }
 0x3af   :  { %v1522_v19 = vadd.f32 1.0, %v1672_v10  ;;  %v1674_v25 = vpop.eup %1673 }
 0x3b0   :  { %v1526_v26 = vadd.f32 1.0, %v1674_v25 }
 0x3b1   :  { %1675 = vrcp.f32 %v1522_v19 }
 0x3b2   :  { %1677 = vrcp.f32 %v1524_v31 }
 0x3b3   :  { %1679 = vrcp.f32 %v1526_v26 }
 0x3be   :  { %v1676_v49 = vpop.eup %1675 }
 0x3bf   :  { %1560 = vperm.xlu1 %1648, %v1676_v49   ;;  %v1678_v18 = vpop.eup %1677 }
 0x3c0   :  { %v1680_v29 = vpop.eup %1679 }
 0x3c3   :  { %1570 = vperm.xlu1 %1648, %v1678_v18  }
 0x3c7   :  { %1580 = vperm.xlu1 %1648, %v1680_v29  }
 0x401   :  { %v1551_v20 = vpop.permute.xlu1 %1550 }
 0x402   :  { %v1585_v24 = vmul.f32 %v1681_v7, %v1551_v20  ;;  %v1586_v12 = vmul.f32 %v1682_v22, %v1551_v20 }
 0x404   :  { %1601 = vst [vmem:[#allocation5 + $0x10] sm:$0xff] %v1585_v24  ;;  %1602 = vst [vmem:[#allocation5 + $0x18] sm:$0xff] %v1586_v12 }
 0x409   :  { %v1546_v21 = vpop.permute.xlu0 %1545 }
 0x40a   :  { %v1583_v33 = vmul.f32 %v1683_v11, %v1546_v21  ;;  %v1584_v52 = vmul.f32 %v1684_v35, %v1546_v21 }
 0x40c   :  { %1599 = vst [vmem:[#allocation5] sm:$0xff] %v1583_v33  ;;  %1600 = vst [vmem:[#allocation5 + $0x8] sm:$0xff] %v1584_v52 }
 0x40d   :  { %v1556_v44 = vpop.permute.xlu0 %1555 }
 0x40e   :  { %v1587_v53 = vmul.f32 %v1685_v58, %v1556_v44  ;;  %v1588_v15 = vmul.f32 %v1686_v59, %v1556_v44 }
 0x410   :  { %1603 = vst [vmem:[#allocation5 + $0x20] sm:$0xff] %v1587_v53  ;;  %1604 = vst [vmem:[#allocation5 + $0x28] sm:$0xff] %v1588_v15 }
 0x411   :  { %v1566_v61 = vpop.permute.xlu0 %1565 }
 0x412   :  { %v1591_v32 = vmul.f32 %v1687_v63, %v1566_v61  ;;  %v1592_v1 = vmul.f32 %v1688_v0, %v1566_v61 }
 0x414   :  { %1607 = vst [vmem:[#allocation5 + $0x40] sm:$0xff] %v1591_v32  ;;  %1608 = vst [vmem:[#allocation5 + $0x48] sm:$0xff] %v1592_v1 }
 0x415   :  { %v1576_v2 = vpop.permute.xlu0 %1575 }
 0x416   :  { %v1595_v3 = vmul.f32 %v1689_v41, %v1576_v2  ;;  %v1596_v45 = vmul.f32 %v1690_v43, %v1576_v2 }
 0x418   :  { %1611 = vst [vmem:[#allocation5 + $0x60] sm:$0xff] %v1595_v3  ;;  %1612 = vst [vmem:[#allocation5 + $0x68] sm:$0xff] %v1596_v45 }
 0x43a   :  { %v1561_v4 = vpop.permute.xlu1 %1560 }
 0x43b   :  { %v1589_v34 = vmul.f32 %v1691_v8, %v1561_v4  ;;  %v1590_v5 = vmul.f32 %v1692_v62, %v1561_v4 }
 0x43d   :  { %1605 = vst [vmem:[#allocation5 + $0x30] sm:$0xff] %v1589_v34  ;;  %1606 = vst [vmem:[#allocation5 + $0x38] sm:$0xff] %v1590_v5 }
 0x43e   :  { %v1571_v6 = vpop.permute.xlu1 %1570 }
 0x43f   :  { %v1593_v42 = vmul.f32 %v1693_v40, %v1571_v6  ;;  %v1594_v46 = vmul.f32 %v1694_v36, %v1571_v6 }
 0x441   :  { %1609 = vst [vmem:[#allocation5 + $0x50] sm:$0xff] %v1593_v42  ;;  %1610 = vst [vmem:[#allocation5 + $0x58] sm:$0xff] %v1594_v46 }
 0x442   :  { %v1581_v38 = vpop.permute.xlu1 %1580 }
 0x443   :  { %v1597_v48 = vmul.f32 %v1695_v47, %v1581_v38  ;;  %v1598_v51 = vmul.f32 %v1696_v50, %v1581_v38 }
 0x445   :  { %1613 = vst [vmem:[#allocation5 + $0x70] sm:$0xff] %v1597_v48  ;;  %1614 = vst [vmem:[#allocation5 + $0x78] sm:$0xff] %v1598_v51 }
 0x446   :  { %1728 = shalt.err (!%p1725_p9)
}
 0x447   :  { %1626 = dma.vmem_to_hbm [thread:$0]  %s1621_s10, 2048, %s2314_s5, [#allocation4], %s1742_s21, %s1742_s21, %s1743_s22  }
 0x448   :  { %1739 = dma.done.wait [#allocation4], 2048  }
 0x449   :  { %1740 = vsyncadd [#allocation4], 4294965248 }
 0x44a   :  { %1630 = vsyncpa [#allocation3], 1 }
 0x44b   :  { %1631 = vsyncpa [#allocation4], 1 }

</bundles_post_ra>
